<compile_context>
chip_gen: v7x
topology: tpu7x:2x2x1
jax: 0.10.0
libtpu: 0.0.40
codegen_flags: <defaults>
</compile_context>

<pallas_src>
import jax
import jax.numpy as jnp
from jax.experimental import pallas as pl
from jax.experimental.pallas import tpu as pltpu


def _spatial_pool_kernel(attn_ref, x_ref, o_ref):
    # attn_ref: (K, N)      softmax already applied, cast to x dtype
    # x_ref:    (bt, N, ct) batch/channel tile, streamed in native dtype
    # o_ref:    (bt, K, ct)
    out = jnp.einsum(
        "kn,bnc->bkc",
        attn_ref[...],
        x_ref[...],
        preferred_element_type=jnp.float32,
    )
    o_ref[...] = out.astype(o_ref.dtype)


def _vmem_capacity_bytes() -> int:
    try:
        return int(pltpu.get_tpu_info().vmem_capacity_bytes)
    except Exception:
        return 128 * 1024 * 1024  # v5e/v6e capacity as a safe fallback


def _choose_tiles(B, N, C, itemsize, vmem_cap):
    """Pick (bt, ct) so the streamed (bt, N, ct) x slab stays within ~1/8 of
    VMEM capacity (room for double buffering + output buffers on every
    generation) while exposing >= 2 (preferably even) parallel grid steps."""
    budget = max(vmem_cap // 8, 1 << 20)  # ~8 MiB v7x, ~16 MiB v6e/v5e

    # Channel tile: full C if one batch element fits, otherwise the largest
    # lane-dense multiple of 128 within budget (keeps stores unmasked).
    if N * C * itemsize <= budget or C <= 128:
        ct = C
    else:
        ct = max(128, (budget // (N * itemsize)) // 128 * 128)
        ct = min(ct, C)

    bt = max(1, min(B, budget // max(1, N * ct * itemsize)))

    gb, gc = pl.cdiv(B, bt), pl.cdiv(C, ct)
    # At least two grid steps so the parallel axes can shard across v7x's 2 TCs.
    if gb * gc < 2 and B > 1:
        bt = (B + 1) // 2
        gb = pl.cdiv(B, bt)
    # Prefer an even total step count (even split across the two TensorCores).
    if gb > 1 and (gb * gc) % 2 == 1:
        bt_even = max(1, -(-B // (gb + 1)))
        if (pl.cdiv(B, bt_even) * gc) % 2 == 0:
            bt = bt_even
    return bt, ct


def spatial_pool(x, weight, pool_len):
    """x: (B, S, C) with S >= pool_len; weight: (K, pool_len). Returns (B, K, C)."""
    B, S, C = x.shape
    K, N = weight.shape
    assert S >= pool_len and N == pool_len, "input length must be >= pool_len"

    # Softmax is batch-independent -> computed once outside the grid loop.
    # Math in f32; operand cast to the streamed dtype so the MXU sees matching
    # operands (bf16 x bf16 -> f32 accumulation via preferred_element_type).
    # NOTE: in the bf16 path the downcast attention rows no longer sum exactly
    # to 1 (matches the loose bf16 tolerance; avoids upcasting the big slab).
    attn = jax.nn.softmax(weight.astype(jnp.float32), axis=1).astype(x.dtype)

    itemsize = jnp.dtype(x.dtype).itemsize

    # Sequence tail window (last N tokens): handled directly in the x BlockSpec
    # when the offset is block- and sublane-aligned (zero extra HBM traffic);
    # otherwise fall back to a wrapper slice fused into the pallas operand.
    off = S - N
    sublane_mult = 8 * max(1, 4 // itemsize)  # 8 (f32) / 16 (bf16) / 32 (int8)
    if off == 0:
        x_in, seq_blk, fused_slice = x, 0, False
    elif off % N == 0 and N % sublane_mult == 0:
        x_in, seq_blk, fused_slice = x, off // N, False
    else:
        x_in, seq_blk, fused_slice = x[:, off:, :], 0, True

    vmem_cap = _vmem_capacity_bytes()
    bt, ct = _choose_tiles(B, N, C, itemsize, vmem_cap)
    grid = (pl.cdiv(B, bt), pl.cdiv(C, ct))

    # Real double-buffered footprint (in + out) + resident attn, with headroom.
    footprint = 2 * (bt * N * ct + bt * K * ct + K * N) * itemsize
    vmem_limit = int(min(vmem_cap, max(footprint + (4 << 20), 16 << 20)))

    cost = pl.CostEstimate(
        flops=2 * B * K * N * C,
        transcendentals=0,
        bytes_accessed=(B * N * C + B * K * C + K * N) * itemsize,
    )

    return pl.pallas_call(
        _spatial_pool_kernel,
        out_shape=jax.ShapeDtypeStruct((B, K, C), x.dtype),
        grid=grid,
        in_specs=[
            pl.BlockSpec((K, N), lambda i, j: (0, 0)),                # attn (resident)
            pl.BlockSpec((bt, N, ct), lambda i, j: (i, seq_blk, j)),  # x slab
        ],
        out_specs=pl.BlockSpec((bt, K, ct), lambda i, j: (i, 0, j)),
        compiler_params=pltpu.CompilerParams(
            dimension_semantics=("parallel", "parallel"),
            vmem_limit_bytes=vmem_limit,
            allow_input_fusion=[False, True] if fused_slice else None,
        ),
        cost_estimate=cost,
    )(attn, x_in)


def _reference(x, weight, pool_len):
    x_sl = x[:, x.shape[1] - pool_len:, :].astype(jnp.float32)
    attn = jax.nn.softmax(weight.astype(jnp.float32), axis=1)
    return jnp.einsum("kn,bnc->bkc", attn, x_sl).astype(x.dtype)


if __name__ == "__main__":
    # small shapes: batch=2, seq=8 (== pool_len), channels=32, classes=4
    B, S, C = 2, 8, 32
    pool_len, num_classes = 8, 4

    key = jax.random.PRNGKey(0)
    kx, kw, kx2, kx3 = jax.random.split(key, 4)
    x = jax.random.normal(kx, (B, S, C), dtype=jnp.float32)
    # deterministic trunc_normal_(std=0.02) init for weight (K, N)
    weight = 0.02 * jax.random.truncated_normal(
        kw, -2.0, 2.0, (num_classes, pool_len), dtype=jnp.float32)

    # f32 path, S == pool_len (no seq offset)
    out = jax.block_until_ready(spatial_pool(x, weight, pool_len))
    ref = _reference(x, weight, pool_len)
    assert out.shape == (B, num_classes, C)
    assert jnp.allclose(out, ref, atol=1e-5, rtol=1e-5)

    # f32 path, S == 2 * pool_len (block-aligned tail handled in the BlockSpec)
    x2 = jax.random.normal(kx2, (B, 2 * pool_len, C), dtype=jnp.float32)
    out2 = jax.block_until_ready(spatial_pool(x2, weight, pool_len))
    ref2 = _reference(x2, weight, pool_len)
    assert jnp.allclose(out2, ref2, atol=1e-5, rtol=1e-5)

    # f32 path, S = 12 (unaligned tail -> wrapper slice fused into the operand)
    x3 = jax.random.normal(kx3, (B, 12, C), dtype=jnp.float32)
    out3 = jax.block_until_ready(spatial_pool(x3, weight, pool_len))
    ref3 = _reference(x3, weight, pool_len)
    assert jnp.allclose(out3, ref3, atol=1e-5, rtol=1e-5)

    # bf16 streaming path (attn downcast to bf16, MXU accumulates in f32)
    xb = x.astype(jnp.bfloat16)
    outb = jax.block_until_ready(spatial_pool(xb, weight, pool_len))
    refb = _reference(xb, weight, pool_len)
    assert jnp.allclose(outb.astype(jnp.float32), refb.astype(jnp.float32),
                        atol=2e-2, rtol=2e-2)

    print("KERNEL_OK")
</pallas_src>

<mosaic_0001>
module attributes {stable_mosaic.version = 11 : i64} {
  func.func @_spatial_pool_kernel(%arg0: i32, %arg1: i32, %arg2: memref<4x8xf32, #tpu.memory_space<vmem>>, %arg3: memref<1x8x32xf32, #tpu.memory_space<vmem>>, %arg4: memref<1x4x32xf32, #tpu.memory_space<vmem>>) attributes {dimension_semantics = [#tpu.dimension_semantics<parallel>, #tpu.dimension_semantics<parallel>], iteration_bounds = array<i64: 2, 1>, scalar_prefetch = 0 : i64, scratch_operands = 0 : i64, tpu.core_type = #tpu.core_type<tc>, window_params = [{pipeline_mode = #tpu.pipeline_mode<synchronous>, transform_indices = @transform_0, window_bounds = array<i64: 4, 8>}, {transform_indices = @transform_1, window_bounds = array<i64: 1, 8, 32>}, {transform_indices = @transform_2, window_bounds = array<i64: 1, 4, 32>}]} {
    %c0 = arith.constant 0 : index
    %c0_0 = arith.constant 0 : index
    %0 = vector.load %arg2[%c0, %c0_0] : memref<4x8xf32, #tpu.memory_space<vmem>>, vector<4x8xf32>
    %c0_1 = arith.constant 0 : index
    %c0_2 = arith.constant 0 : index
    %c0_3 = arith.constant 0 : index
    %1 = vector.load %arg3[%c0_1, %c0_2, %c0_3] : memref<1x8x32xf32, #tpu.memory_space<vmem>>, vector<1x8x32xf32>
    "tpu.trace_start"() <{level = 10 : i32, message = "kn,bnc->bkc"}> : () -> ()
    %cst = arith.constant dense<0.000000e+00> : vector<1x32x4xf32>
    %2 = tpu.matmul %1, %0, %cst {dimension_numbers = #tpu.dot_dimension_numbers<[1], [1], [0, 2], [0], [0, 0, 0, 2, 1, 0], [], []>} : vector<1x8x32xf32>, vector<4x8xf32>, vector<1x32x4xf32> -> vector<1x32x4xf32>
    %3 = tpu.transpose %2, [0, 2, 1] : vector<1x32x4xf32> -> vector<1x4x32xf32>
    "tpu.trace_stop"() : () -> ()
    %c0_4 = arith.constant 0 : index
    %c0_5 = arith.constant 0 : index
    %c0_6 = arith.constant 0 : index
    %4 = vector.load %arg4[%c0_4, %c0_5, %c0_6] : memref<1x4x32xf32, #tpu.memory_space<vmem>>, vector<1x4x32xf32>
    tpu.vector_store %arg4[%c0_4, %c0_5, %c0_6], %3 {strides = array<i32>} : memref<1x4x32xf32, #tpu.memory_space<vmem>>, vector<1x4x32xf32>,
    return
  }
  func.func @transform_0(%arg0: i32, %arg1: i32) -> (i32, i32) {
    %c0_i32 = arith.constant 0 : i32
    %c0_i32_0 = arith.constant 0 : i32
    %c0_i32_1 = arith.constant 0 : i32
    return %c0_i32, %c0_i32_0 : i32, i32
  }
  func.func @transform_1(%arg0: i32, %arg1: i32) -> (i32, i32, i32) {
    %c0_i32 = arith.constant 0 : i32
    %c0_i32_0 = arith.constant 0 : i32
    return %arg0, %c0_i32, %arg1 : i32, i32, i32
  }
  func.func @transform_2(%arg0: i32, %arg1: i32) -> (i32, i32, i32) {
    %c0_i32 = arith.constant 0 : i32
    %c0_i32_0 = arith.constant 0 : i32
    return %arg0, %c0_i32, %arg1 : i32, i32, i32
  }
}

</mosaic_0001>

<bundles_post_ra>
// kernel: tpu_custom_call.1
= control target key start
LH: loop header
LB: loop body
LE: loop exit
PB: predicated region body
PF: predicated region fallthrough
CT: control target
= control target key end

     0   :  { %7 = vsyncpa [#allocation3], 0  ;;  %s955_s0 = inlined_call_operand.hbm [shape: f32[4,8], index: 0, kind: input, shape index: {}]   ;;  %s956_s1 = inlined_call_operand.hbm [shape: f32[2,8,32], index: 1, kind: input, shape index: {}]   ;;  %s957_s2 = inlined_call_operand.hbm [shape: f32[2,4,32], index: 2, kind: output, shape index: {}]  }
   0x1   :  { %8 = vsyncpa [#allocation6], 0 }
   0x2   :  { %10 = vsyncpa [#allocation6 + $0x1], 0 }
   0x3   :  { %11 = vsyncpa [#allocation4], 0 }
   0x4   :  { %13 = vsyncpa [#allocation4 + $0x1], 0  ;;  %s738_s9 = smov 0   ;;  %s740_s10 = smov 0  }
   0x5   :  { %s742_s11 = smov 0   ;;  %s744_s12 = smov 0  }
   0x6   :  { %s746_s13 = smov 0   ;;  %s748_s14 = smov 0  }
   0x7 LB: > { %s465_s15 = sadd.s32 4294967295, %s718_s14   ;;  %s466_s16 = sadd.s32 4294967294, %s718_s14   ;;  %s718_s14 = sphi %s748_s14, %s19_s14   ;;  %s714_s13 = sphi %s746_s13, %s982_s13   ;;  %s710_s12 = sphi %s744_s12, %s981_s12   ;;  %s706_s11 = sphi %s742_s11, %s980_s11   ;;  %s702_s10 = sphi %s740_s10, %s979_s10   ;;  %s698_s9 = sphi %s738_s9, %s978_s9  }
   0x8   : > { %p74_p0 = scmp.ne.s32.totalorder %s702_s10, %s698_s9  ;;  %p772_p1 = scmp.eq.s32.totalorder %s465_s15, 0 }
   0x9   : > { %p776_p2 = scmp.eq.s32.totalorder %s465_s15, 1  ;;  %p106_p3 = scmp.eq.s32.totalorder %s466_s16, 1 }
   0xa   : > { %s962_s17 = scalar_select %p772_p1, 1, 0 }
   0xb   : > { %s963_s18 = scalar_select %p776_p2, 1, 0 }
   0xc   : > { %p782_p4 = por %p772_p1, %p74_p0  ;;  %p467_p5 = scmp.ge.s32.totalorder %s718_s14, 1 }
   0xd   : > { %p787_p6 = por %p106_p3, %p74_p0  ;;  %p113_p7 = scmp.lt.s32.totalorder %s718_s14, 3 }
   0xe   : > { %s964_s19 = scalar_select %p782_p4, 1, 0 }
   0xf   : > { %s965_s20 = scalar_select %p787_p6, 1, 0 }
  0x10   : > { %p792_p8 = pnand %p467_p5, %p113_p7  ;;  %s720_s22 = smov [#allocation2]  }
  0x11   : > { %s126_s23 = sshll.u32 %s720_s22, 4  ;;  %s31_s25 = sadd.s32 1, %s714_s13  ;;  %s127_s23 = int_to_ptr.vmem [resolvable:$true] %s126_s23 }
  0x12   : > { %s966_s21 = scalar_select %p792_p8, 1, 0 }
  0x13   : > { %p508_p10 = pneg %p792_p8  ;;  %s61_s26 = sadd.s32 1, %s706_s11 }
  0x14   : > { %p807_p12 = scmp.ge.s32.totalorder %s31_s25, 2  ;;  %s574_s30 = scalar_lea.hbm %s955_s0, 64 }
  0x15   : > { %p801_p11 = pnand %p508_p10, %p772_p1  ;;  %p575_p13 = scmp.ne.s32.totalorder %s955_s0, %s574_s30 }
  0x16   : > { %s968_s27 = scalar_select %p807_p12, 1, 0 }
  0x17   : > { %p576_p0 = pneg %p801_p11  ;;  %p581_p7 = scmp.lt.u32.totalorder %s574_s30, %s955_s0 }
  0x19   : > { %p577_p3 = pnand %p576_p0, %p575_p13 }
  0x1b   : > { %p578_p5 = pneg %p577_p3 }
  0x1d   : > { %p583_p10 = pnand %p581_p7, %p578_p5 }
  0x1f   : > { %586 = shalt.err (!%p583_p10)
}
  0x20   : > { %s587_s7 = scalar_lea.vmem %s127_s23, 64  ;;  %p595_p1 = scmp.lt.s32.totalorder %s127_s23, %s127_s23 }
  0x21   : > { %p588_p9 = scmp.ne.s32.totalorder %s127_s23, %s587_s7  ;;  %p596_p8 = scmp.lt.s32.totalorder %s587_s7, %s587_s7 }
  0x23   : > { %p590_p6 = pnand %p588_p9, %p576_p0  ;;  %p597_p2 = por %p596_p8, %p595_p1 }
  0x25   : > { %p591_p4 = pneg %p590_p6 }
  0x27   : > { %p598_p12 = pnand %p597_p2, %p591_p4 }
  0x29   : > { %601 = shalt.err (!%p598_p12)
}
  0x2a   : > { %511 = dma.hbm_to_vmem [thread:$0]  (!%p801_p11), %s955_s0, 64, %s127_s23, [#allocation3]  }
  0x2b   : > { %p969_p1 = scmp.ne.s32.totalorder %s968_s27, 0  ;;  %p68_p2 = scmp.ne.s32.totalorder %s706_s11, %s702_s10 }
  0x2c   : > { %p69_p4 = scmp.eq.s32.totalorder %s718_s14, 0  ;;  %p521_p6 = scmp.lt.s32.totalorder %s718_s14, 2 }
  0x2d   : > { %s984_s25 = smov (%p969_p1, %s31_s25), 0  ;;  %p970_p12 = scmp.ne.s32.totalorder %s963_s18, 0 }
  0x2e   : > { %s56_s16 = ssub.s32 %s714_s13, %s984_s25  ;;  %p70_p9 = por %p69_p4, %p68_p2 }
  0x2f   : > { %p59_p8 = scmp.eq.s32.totalorder %s56_s16, 0  ;;  %p839_p13 = por %p970_p12, %p68_p2 }
  0x30   : > { %s137_s24 = sand.u32 1, %s706_s11   ;;  %s471_s27 = sshll.u32 %s714_s13, 7 }
  0x31   : > { %s847_s28 = scalar_select %p59_p8, %s706_s11, %s61_s26  }
  0x32   : > { %s470_s23 = sshll.u32 %s137_s24, 3  ;;  %s853_s3 = scalar_lea.hbm %s956_s1, %s471_s27 }
  0x33   : > { %s141_s18 = scalar_lea.vmem [#allocation5], %s470_s23  ;;  %p857_p11 = pnand %p521_p6, %p70_p9 }
  0x34   : > { %s149_s4 = sshll.u32 %s141_s18, 4  ;;  %s138_s26 = scalar_lea.sflag [#allocation6], %s137_s24  ;;  %s855_s4 = int_to_ptr.vmem [resolvable:$true] %s149_s4 }
  0x35   : > { %s602_s6 = scalar_lea.hbm %s853_s3, 128  ;;  %p604_p3 = pneg %p857_p11 }
  0x36   : > { %p603_p0 = scmp.ne.s32.totalorder %s853_s3, %s602_s6  ;;  %s607_s15 = scalar_lea.hbm %s956_s1, 256 }
  0x37   : > { %p608_p10 = scmp.lt.u32.totalorder %s853_s3, %s956_s1  ;;  %p609_p1 = scmp.lt.u32.totalorder %s607_s15, %s602_s6 }
  0x38   : > { %p605_p5 = pnand %p604_p3, %p603_p0  ;;  %p611_p4 = scmp.lt.u32.totalorder %s602_s6, %s853_s3 }
  0x39   : > { %p610_p2 = por %p609_p1, %p608_p10 }
  0x3a   : > { %p606_p7 = pneg %p605_p5 }
  0x3b   : > { %p612_p6 = por %p611_p4, %p610_p2 }
  0x3d   : > { %p613_p8 = pnand %p612_p6, %p606_p7 }
  0x3f   : > { %616 = shalt.err (!%p613_p8)
}
  0x40   : > { %s617_s24 = scalar_lea.vmem %s855_s4, 128  ;;  %s721_s27 = smov [#allocation5]  }
  0x41   : > { %p618_p9 = scmp.ne.s32.totalorder %s855_s4, %s617_s24  ;;  %s622_s29 = sshll.u32 %s721_s27, 4  ;;  %s623_s29 = int_to_ptr.vmem [resolvable:$false] %s622_s29 }
  0x42   : > { %s624_s30 = scalar_lea.vmem %s623_s29, 256  ;;  %p625_p5 = scmp.lt.s32.totalorder %s855_s4, %s623_s29 }
  0x43   : > { %p620_p12 = pnand %p618_p9, %p604_p3  ;;  %p626_p10 = scmp.lt.s32.totalorder %s624_s30, %s617_s24 }
  0x45   : > { %p621_p0 = pneg %p620_p12  ;;  %p627_p1 = por %p626_p10, %p625_p5 }
  0x47   : > { %p628_p2 = pnand %p627_p1, %p621_p0 }
  0x49   : > { %631 = shalt.err (!%p628_p2)
}
  0x4a   : > { %515 = dma.hbm_to_vmem [thread:$0]  (!%p857_p11), %s853_s3, 128, %s855_s4, %s138_s26  }
  0x4b   : > { %p973_p7 = scmp.ne.s32.totalorder %s966_s21, 0 }
  0x4c   : > { %p974_p3 = scmp.ne.s32.totalorder (!%p973_p7), %s962_s17, 0 }
  0x4d   : > { %158 = sbr.rel (%p973_p7) target bundleno = 579 (0x243), region = 28 }
  0x54   : > { %685 = dma.done.wait (%p974_p3), [#allocation3], 64  }
  0x55   : > { %687 = vsyncadd (%p974_p3), [#allocation3], 4294967232  ;;  %s893_s18 = sand.u32 1, %s702_s10   ;;  %p975_p4 = scmp.ne.s32.totalorder %s964_s19, 0 }
  0x56   : > { %s474_s6 = sshll.u32 %s893_s18, 3  ;;  %s165_s5 = scalar_lea.sflag [#allocation6], %s893_s18 }
  0x57   : > { %s168_s7 = scalar_lea.vmem [#allocation5], %s474_s6 }
  0x58   : > { %689 = dma.done.wait (%p975_p4), %s165_s5, 128  }
  0x59   : > { %691 = vsyncadd (%p975_p4), %s165_s5, 4294967168  ;;  %v190_v0 = vld [vmem:[%s168_s7] sm:$0xff]  ;;  %v189_v1 = vld [vmem:[#allocation2] sm:$0xf]  ;;  %vm223_vm0 = vcmask 64512   ;;  %s475_s17 = sshll.u32 %s893_s18, 2 }
  0x5a   : > { %191 = vxpose.xlu0.b32.start.end [1/1] (short) (narrow) %v190_v0, 32  ;;  %490 = vmatprep.subr.msk.mxu0 %vm223_vm0, %v189_v1  ;;  %s482_s19 = sshll.u32 %s710_s12, 6  ;;  %s188_s21 = scalar_lea.vmem [#allocation7], %s475_s17  ;;  %vm356_vm1 = vcmask 257024  }
  0x5b   : > { %498 = vmatprep.subr.msk.mxu1 %vm223_vm0, %v189_v1  ;;  %491 = vmatpush3.xpose.msk.msra.mxu0 %vm223_vm0, %v189_v1  ;;  %s373_s3 = sshll.u32 %s188_s21, 4  ;;  %s906_s8 = scalar_lea.hbm %s957_s2, %s482_s19  ;;  %s908_s3 = int_to_ptr.vmem [resolvable:$true] %s373_s3 }
  0x5c   : > { %499 = vmatpush3.xpose.msk.msra.mxu1 %vm223_vm0, %v189_v1  ;;  %s359_s15 = scalar_lea.sflag [#allocation4], %s893_s18  ;;  %s632_s16 = scalar_lea.vmem %s908_s3, 64 }
  0x5d   : > { %p633_p11 = scmp.ne.s32.totalorder %s908_s3, %s632_s16  ;;  %s722_s12 = smov [#allocation7]  }
  0x5e   : > { %s636_s23 = sshll.u32 %s722_s12, 4  ;;  %s637_s23 = int_to_ptr.vmem [resolvable:$false] %s636_s23 }
  0x5f   : > { %p634_p6 = pnand %p633_p11, %p839_p13  ;;  %s638_s24 = scalar_lea.vmem %s637_s23, 128 }
  0x60   : > { %p639_p9 = scmp.lt.s32.totalorder %s908_s3, %s637_s23  ;;  %p640_p12 = scmp.lt.s32.totalorder %s638_s24, %s632_s16 }
  0x61   : > { %p635_p8 = pneg %p634_p6 }
  0x62   : > { %p641_p0 = por %p640_p12, %p639_p9 }
  0x64   : > { %p642_p5 = pnand %p641_p0, %p635_p8 }
  0xda   : > { %v207_v2 = vpop.trf.xlu0 }
  0xdb   : > { %492 = vmatprep.mubr.msk.f32.mxu0 %vm223_vm0, %v207_v2 }
  0xde   : > { %v208_v3 = vpop.trf.xlu0 }
  0xdf   : > { %493 = vmatmul.mubr.msk.f32.vlgmr.msra.gmra.mrb[0].mxu0 %vm223_vm0, %v208_v3 }
  0xe2   : > { %v209_v4 = vpop.trf.xlu0 }
  0xe3   : > { %495 = vmatprep.mubr.msk.f32.mxu1 %vm223_vm0, %v209_v4 }
  0xe6   : > { %v210_v5 = vpop.trf.xlu0 }
  0xe7   : > { %496 = vmatmul.mubr.msk.f32.vlgmr.msra.gmra.mrb[0].mxu1 %vm223_vm0, %v210_v5 }
 0x1b2   : > { %v494_v6 = vpop.f32.mrb[0].mxu0 }
 0x1b3   : > { %v305_v7 = vpop.f32.mrb[1].mxu0 }
 0x1b4   : > { %324 = vxpose.xlu0.b32.start [1/4] (short) (narrow) %v305_v7, 8 }
 0x1b8   : > { %325 = vxpose.xlu0.b32.cont [2/4] (short) (narrow) %v494_v6, 8 }
 0x1ba   : > { %v497_v8 = vpop.f32.mrb[0].mxu1 }
 0x1bb   : > { %v315_v9 = vpop.f32.mrb[1].mxu1 }
 0x1bc   : > { %326 = vxpose.xlu0.b32.cont [3/4] (short) (narrow) %v315_v9, 8 }
 0x1c0   : > { %327 = vxpose.xlu0.b32.end [4/4] (short) (narrow) %v497_v8, 8 }
 0x234   : > { %v340_v10 = vpop.trf.xlu0 }
 0x235   : > { %357 = vst.msk [vmem:[%s188_s21] sm:$0xf] %vm356_vm1, %v340_v10 }
 0x236   : > { %645 = shalt.err (!%p642_p5)
}
 0x237   : > { %s646_s27 = scalar_lea.hbm %s906_s8, 64  ;;  %s650_s18 = scalar_lea.hbm %s957_s2, 128 }
 0x238   : > { %p647_p10 = scmp.ne.s32.totalorder %s906_s8, %s646_s27  ;;  %p651_p7 = scmp.lt.u32.totalorder %s906_s8, %s957_s2 }
 0x239   : > { %p652_p3 = scmp.lt.u32.totalorder %s650_s18, %s646_s27  ;;  %p654_p11 = scmp.lt.u32.totalorder %s646_s27, %s906_s8 }
 0x23a   : > { %p648_p1 = pnand %p647_p10, %p839_p13 }
 0x23b   : > { %p653_p4 = por %p652_p3, %p651_p7 }
 0x23c   : > { %p649_p2 = pneg %p648_p1 }
 0x23d   : > { %p655_p6 = por %p654_p11, %p653_p4 }
 0x23f   : > { %p656_p8 = pnand %p655_p6, %p649_p2 }
 0x241   : > { %659 = shalt.err (!%p656_p8)
}
 0x242   : > { %506 = dma.vmem_to_hbm [thread:$0]  (%p839_p13), %s908_s3, 64, %s906_s8, %s359_s15  }
 0x243 PF: > { %s385_s7 = sand.u32 1, %s698_s9   ;;  %p976_p9 = scmp.ne.s32.totalorder %s965_s20, 0 }
 0x244   : > { %p977_p12 = scmp.ge.s32.totalorder %s718_s14, 2  ;;  %s386_s17 = scalar_lea.sflag [#allocation4], %s385_s7 }
 0x246   : > { %p517_p0 = pnand %p977_p12, %p976_p9 }
 0x248   : > { %693 = dma.done.wait (!%p517_p0), %s386_s17, 64  }
 0x249   : > { %695 = vsyncadd (!%p517_p0), %s386_s17, 4294967232  ;;  %s19_s14 = sadd.s32 1, %s718_s14   ;;  %s978_s9 = smov %s702_s10 }
 0x24a   : > { %p16_p5 = scmp.ge.s32.totalorder %s19_s14, 4   ;;  %s979_s10 = smov %s706_s11 }
 0x24b   : > { %s980_s11 = smov %s847_s28  ;;  %s981_s12 = smov %s714_s13 }
 0x24c   : > { %s982_s13 = smov %s984_s25  ;;  %18 = sbr.rel (!%p16_p5) target bundleno = 7 (0x7), region = 78 }
 0x253   :  { %391 = vsyncpa [#allocation3], 1 }
 0x254   :  { %393 = vsyncpa [#allocation3 + $0x1], 1 }
 0x255   :  { %394 = vsyncpa [#allocation6], 1 }
 0x256   :  { %396 = vsyncpa [#allocation6 + $0x1], 1 }
 0x257   :  { %397 = vsyncpa [#allocation4], 1 }
 0x258   :  { %399 = vsyncpa [#allocation4 + $0x1], 1 }

</bundles_post_ra>
